<compile_context>
chip_gen: v5e
topology: v5e:2x2
jax: 0.10.0
libtpu: 0.0.40
codegen_flags: <defaults>
</compile_context>

<pallas_src>
import jax
import jax.numpy as jnp
from jax.experimental import pallas as pl
from jax.experimental.pallas import tpu as pltpu

_TARGET_BLOCK_BYTES = 4 * 1024 * 1024   # ~4 MiB per buffer per array
_SMALL_WHOLE_ARRAY_BYTES = 4 * 1024 * 1024
_VMEM_LIMIT_BYTES = 40 * 1024 * 1024    # 3 arrays x 2 buffers x 4 MiB = 24 MiB + margin


def _sub_kernel(x_ref, y_ref, o_ref):
    # Hot path: elementwise x - y on the VMEM tile (pure VPU, native dtype).
    o_ref[...] = x_ref[...] - y_ref[...]


def _round_down(x, m):
    return (x // m) * m


def isub(x, y):
    """Compute x - y with a Pallas TPU kernel (ISub forward semantics)."""
    assert x.shape == y.shape, "ISub requires matching shapes"
    assert x.dtype == y.dtype, "ISub requires matching dtypes"
    orig_shape = x.shape
    dtype = x.dtype
    n = x.size
    itemsize = jnp.dtype(dtype).itemsize

    if n == 0:
        return x

    cost = pl.CostEstimate(flops=n, transcendentals=0,
                           bytes_accessed=3 * n * itemsize)

    if n % 128 == 0:
        # Lane-aligned path: reshape (free bitcast, row-major contiguous) to a
        # lane-dense 2D slab whose last dim is a multiple of 128.
        lane_w = next(w for w in (1024, 512, 256, 128) if n % w == 0)
        rows = n // lane_w
        x2d = x.reshape(rows, lane_w)
        y2d = y.reshape(rows, lane_w)

        pack = max(8, 32 // itemsize)  # sublane pack: 8 f32 / 16 bf16 / 32 int8
        target_rows = max(pack, _TARGET_BLOCK_BYTES // (lane_w * itemsize))

        if rows < 2 * pack:
            # Tiny array: single full-dim block (allowed: equals array dims).
            tile_rows = rows
        else:
            # Keep >= 2 programs so both v7x TensorCores share the streaming,
            # cap at ~4 MiB per buffer, keep tile a multiple of the sublane pack.
            half_rows = max(pack, _round_down(pl.cdiv(rows, 2), pack))
            tile_rows = max(pack,
                            _round_down(min(rows, target_rows, half_rows), pack))

        grid = (pl.cdiv(rows, tile_rows),)

        out2d = pl.pallas_call(
            _sub_kernel,
            out_shape=jax.ShapeDtypeStruct((rows, lane_w), dtype),
            grid=grid,
            in_specs=[
                pl.BlockSpec((tile_rows, lane_w), lambda i: (i, 0)),
                pl.BlockSpec((tile_rows, lane_w), lambda i: (i, 0)),
            ],
            out_specs=pl.BlockSpec((tile_rows, lane_w), lambda i: (i, 0)),
            # In-place ISub semantics at the buffer level: output aliases x.
            input_output_aliases={0: 0},
            compiler_params=pltpu.CompilerParams(
                dimension_semantics=("parallel",),
                vmem_limit_bytes=_VMEM_LIMIT_BYTES,
            ),
            cost_estimate=cost,
        )(x2d, y2d)
        return out2d.reshape(orig_shape)

    # Misaligned path: flat size is not a multiple of 128.
    if n * itemsize <= _SMALL_WHOLE_ARRAY_BYTES:
        # Whole-array single block (block == array dims, no grid, no padding).
        x2d = x.reshape(1, n)
        y2d = y.reshape(1, n)
        out2d = pl.pallas_call(
            _sub_kernel,
            out_shape=jax.ShapeDtypeStruct((1, n), dtype),
            input_output_aliases={0: 0},
            compiler_params=pltpu.CompilerParams(
                vmem_limit_bytes=_VMEM_LIMIT_BYTES,
            ),
            cost_estimate=cost,
        )(x2d, y2d)
        return out2d.reshape(orig_shape)

    # TODO(synk): large arrays whose flat size is not a multiple of 128 fall
    # back to plain XLA subtraction (avoids pad/slice copies around the kernel).
    return x - y


if __name__ == "__main__":
    key = jax.random.PRNGKey(0)
    kx, ky = jax.random.split(key)
    x = jax.random.normal(kx, (2, 4, 16, 16), dtype=jnp.float32)
    y = jax.random.normal(ky, (2, 4, 16, 16), dtype=jnp.float32)

    out = jax.block_until_ready(isub(x, y))

    ref = x - y
    assert out.shape == x.shape
    assert out.dtype == x.dtype
    assert jnp.allclose(out, ref, atol=1e-6), "mismatch vs reference"

    # TODO(synk): true Python-level in-place mutation of the caller's tensor is
    # not expressible in JAX (immutable arrays); input_output_aliases gives the
    # buffer-level equivalent.
    print("KERNEL_OK")
</pallas_src>

<mosaic_0001>
module attributes {stable_mosaic.version = 11 : i64} {
  func.func @_sub_kernel(%arg0: i32, %arg1: memref<2x1024xf32, #tpu.memory_space<vmem>>, %arg2: memref<2x1024xf32, #tpu.memory_space<vmem>>, %arg3: memref<2x1024xf32, #tpu.memory_space<vmem>>) attributes {dimension_semantics = [#tpu.dimension_semantics<parallel>], iteration_bounds = array<i64: 1>, scalar_prefetch = 0 : i64, scratch_operands = 0 : i64, tpu.core_type = #tpu.core_type<tc>, window_params = [{transform_indices = @transform_0, window_bounds = array<i64: 2, 1024>}, {transform_indices = @transform_1, window_bounds = array<i64: 2, 1024>}, {transform_indices = @transform_2, window_bounds = array<i64: 2, 1024>}]} {
    %c0 = arith.constant 0 : index
    %c0_0 = arith.constant 0 : index
    %0 = vector.load %arg1[%c0, %c0_0] : memref<2x1024xf32, #tpu.memory_space<vmem>>, vector<2x1024xf32>
    %c0_1 = arith.constant 0 : index
    %c0_2 = arith.constant 0 : index
    %1 = vector.load %arg2[%c0_1, %c0_2] : memref<2x1024xf32, #tpu.memory_space<vmem>>, vector<2x1024xf32>
    %2 = arith.subf %0, %1 : vector<2x1024xf32>
    %c0_3 = arith.constant 0 : index
    %c0_4 = arith.constant 0 : index
    %3 = vector.load %arg3[%c0_3, %c0_4] : memref<2x1024xf32, #tpu.memory_space<vmem>>, vector<2x1024xf32>
    tpu.vector_store %arg3[%c0_3, %c0_4], %2 {strides = array<i32>} : memref<2x1024xf32, #tpu.memory_space<vmem>>, vector<2x1024xf32>,
    return
  }
  func.func @transform_0(%arg0: i32) -> (i32, i32) {
    %c0_i32 = arith.constant 0 : i32
    %c0_i32_0 = arith.constant 0 : i32
    return %arg0, %c0_i32 : i32, i32
  }
  func.func @transform_1(%arg0: i32) -> (i32, i32) {
    %c0_i32 = arith.constant 0 : i32
    %c0_i32_0 = arith.constant 0 : i32
    return %arg0, %c0_i32 : i32, i32
  }
  func.func @transform_2(%arg0: i32) -> (i32, i32) {
    %c0_i32 = arith.constant 0 : i32
    %c0_i32_0 = arith.constant 0 : i32
    return %arg0, %c0_i32 : i32, i32
  }
}

</mosaic_0001>

<bundles_post_ra>
// kernel: tpu_custom_call.1
= control target key start
LH: loop header
LB: loop body
LE: loop exit
PB: predicated region body
PF: predicated region fallthrough
CT: control target
= control target key end

     0   :  { %7 = vsyncpa [#allocation3], 0  ;;  %s134_s0 = inlined_call_operand.hbm [shape: f32[2,1024], index: 0, kind: input, shape index: {}, may-alias: {0,2}]   ;;  %s135_s1 = inlined_call_operand.vmem [shape: f32[2,1024], index: 1, kind: input, shape index: {}]   ;;  %s136_s2 = inlined_call_operand.hbm [shape: f32[2,1024], index: 2, kind: output, shape index: {}, may-alias: {0,2}]  }
   0x1   :  { %8 = vsyncpa [#allocation4], 0  ;;  %s14_s11 = sshll.u32 %s134_s0, 4  ;;  %s105_s12 = smov [#allocation2]   ;;  %s15_s11 = int_to_ptr.hbm [resolvable:$true] %s14_s11 }
   0x2   :  { %s16_s13 = sshll.u32 %s105_s12, 4  ;;  %s17_s13 = int_to_ptr.vmem [resolvable:$true] %s16_s13 }
   0x3   :  { %19 = dma.hbm_to_vmem [thread:$0]  %s15_s11, 256, %s17_s13, [#allocation3]  }
   0x4   :  { %101 = dma.done.wait [#allocation3], 256  }
   0x5   :  { %102 = vsyncadd [#allocation3], 4294967040  ;;  %s106_s14 = smov [#allocation5]   ;;  %s41_s18 = sshll.u32 %s136_s2, 4  ;;  %v26_v0 = vld [vmem:[#allocation2] sm:$0xff]  ;;  %v27_v2 = vld [vmem:[#allocation2 + $0x8] sm:$0xff]  ;;  %s42_s18 = int_to_ptr.hbm [resolvable:$true] %s41_s18 }
   0x6   :  { %s39_s15 = sshll.u32 %s106_s14, 4  ;;  %v28_v1 = vld [vmem:[%s135_s1] sm:$0xff]  ;;  %v29_v4 = vld [vmem:[%s135_s1 + $0x8] sm:$0xff]  ;;  %s40_s15 = int_to_ptr.vmem [resolvable:$true] %s39_s15 }
   0x7   :  { %v30_v3 = vsub.f32 %v26_v0, %v28_v1  ;;  %v31_v5 = vsub.f32 %v27_v2, %v29_v4 }
   0x9   :  { %32 = vst [vmem:[#allocation5] sm:$0xff] %v30_v3 }
   0xa   :  { %33 = vst [vmem:[#allocation5 + $0x8] sm:$0xff] %v31_v5 }
   0xb   :  { %44 = dma.vmem_to_hbm [thread:$0]  %s40_s15, 256, %s42_s18, [#allocation4]  }
   0xc   :  { %103 = dma.done.wait [#allocation4], 256  }
   0xd   :  { %104 = vsyncadd [#allocation4], 4294967040 }
   0xe   :  { %49 = vsyncpa [#allocation3], 1 }
   0xf   :  { %50 = vsyncpa [#allocation4], 1 }

</bundles_post_ra>
